<compile_context>
chip_gen: v6e
topology: v6e:2x2x1
jax: 0.10.0
libtpu: 0.0.40
codegen_flags: <defaults>
</compile_context>

<pallas_src>
import functools

import jax
import jax.numpy as jnp
from jax import lax
from jax.experimental import pallas as pl
from jax.experimental.pallas import tpu as pltpu


_LANES = 128
_NEG_CLAMP = -100.0          # torch.nn.BCELoss clamps log terms at -100.
_MAX_BLOCK_ROWS = 16384      # 12 MiB/step (f32+bf16) -> 24 MiB double-buffered.


def _round_up(x, m):
    return ((x + m - 1) // m) * m


def _bce_sum_kernel(p_ref, y_ref, out_ref, acc_ref, *,
                    inv_n, rows_tot, block_rows, tiles_per_core,
                    mask_start_block, needs_mask):
    c = pl.program_id(0)            # core-split axis ("parallel")
    i = pl.program_id(1)            # streaming / reduction axis ("arbitrary")
    blk = c * tiles_per_core + i    # logical row-block index (may be phantom)

    @pl.when(i == 0)
    def _init():
        acc_ref[...] = jnp.zeros_like(acc_ref)

    p = p_ref[...].astype(jnp.float32)
    y = y_ref[...]
    # Binary-label BCE: one log per element.
    #   q = p if y == 1 else (1 - p);  elem = -clamp(log q, -100)
    # Lane padding (p=0, y=0) gives q=1 -> elem=0, so padded lanes need no mask.
    q = jnp.where(y != 0, p, 1.0 - p)
    elem = -jnp.maximum(jnp.log(q), _NEG_CLAMP)

    def _accum(vals):
        # (block_rows,128) -> (block_rows//8, 8, 128): vreg-wise VALU adds onto
        # the resident accumulator; XLU collapse is deferred to finalize.
        acc_ref[...] += vals.reshape(-1, 8, _LANES).sum(axis=0)

    if needs_mask:
        @pl.when(blk < mask_start_block)
        def _full_block():
            _accum(elem)

        @pl.when(blk >= mask_start_block)
        def _edge_block():
            row = lax.broadcasted_iota(jnp.int32, elem.shape, 0)
            valid = blk * block_rows + row < rows_tot
            _accum(jnp.where(valid, elem, 0.0))
    else:
        _accum(elem)

    @pl.when(i == pl.num_programs(1) - 1)
    def _finalize():
        out_ref[...] = (jnp.sum(acc_ref[...]) * inv_n).reshape(1, 1)


def contrastive_loss(output, label1, label2, *, block_rows=8192):
    """output: (N, 2) probabilities; label1/label2: any shape with N elements."""
    n = output.shape[0]

    # Lane-dense interleaved flattening: element k of the prob stream pairs
    # with element k of the label stream.
    probs_flat = output.reshape(-1)                                    # (2N,)
    labels_flat = (
        jnp.stack([label1.reshape(n), label2.reshape(n)], axis=1)
        .reshape(-1)
        .astype(jnp.bfloat16)                                          # exact for {0,1}
    )

    total = 2 * n
    rows_tot = pl.cdiv(total, _LANES)
    lane_pad = rows_tot * _LANES - total
    if lane_pad:
        # Pad only to the 128-lane boundary (<=127 zeros); block tails are
        # masked in-kernel instead of padded.
        # TODO(synk): when 2N % 128 != 0 this pad is still one extra HBM pass
        # over the prob stream; a zero-copy path would need a separate 1-D
        # tail kernel or allow_input_fusion.
        probs_flat = jnp.pad(probs_flat, (0, lane_pad))
        labels_flat = jnp.pad(labels_flat, (0, lane_pad))
    probs2d = probs_flat.reshape(rows_tot, _LANES)
    labels2d = labels_flat.reshape(rows_tot, _LANES)

    # Block sizing: multiple of 16 (satisfies both f32 and bf16 tiling), no
    # larger than the data, capped for v7x's 64 MiB VMEM.
    block_rows = max(16, min(int(block_rows), _MAX_BLOCK_ROWS))
    block_rows = _round_up(block_rows, 16)
    block_rows = min(block_rows, _round_up(rows_tot, 16))

    tiles = pl.cdiv(rows_tot, block_rows)            # real row blocks
    cores = 2 if tiles >= 2 else 1                   # megacore split (v7x)
    tiles_per_core = pl.cdiv(tiles, cores)

    block_partial = (rows_tot % block_rows) != 0
    phantom = cores * tiles_per_core > tiles         # odd tile count
    needs_mask = block_partial or phantom
    mask_start_block = (tiles - 1) if block_partial else tiles

    def in_map(c, i):
        # Phantom block (if any) is clamped onto the last real block; its
        # contribution is masked to zero in-kernel.
        return (jnp.minimum(c * tiles_per_core + i, tiles - 1), 0)

    bytes_per_step = block_rows * _LANES * (
        probs2d.dtype.itemsize + labels2d.dtype.itemsize)
    vmem_limit = min(96 << 20, 2 * bytes_per_step + (8 << 20))

    kernel = functools.partial(
        _bce_sum_kernel,
        inv_n=1.0 / n,
        rows_tot=rows_tot,
        block_rows=block_rows,
        tiles_per_core=tiles_per_core,
        mask_start_block=mask_start_block,
        needs_mask=needs_mask,
    )

    res = pl.pallas_call(
        kernel,
        out_shape=jax.ShapeDtypeStruct((cores, 1), jnp.float32),
        grid_spec=pltpu.PrefetchScalarGridSpec(
            num_scalar_prefetch=0,
            grid=(cores, tiles_per_core),
            in_specs=[
                pl.BlockSpec((block_rows, _LANES), in_map),
                pl.BlockSpec((block_rows, _LANES), in_map),
            ],
            out_specs=pl.BlockSpec((1, 1), lambda c, i: (c, 0)),
            scratch_shapes=[pltpu.VMEM((8, _LANES), jnp.float32)],
        ),
        compiler_params=pltpu.CompilerParams(
            dimension_semantics=("parallel", "arbitrary"),
            vmem_limit_bytes=vmem_limit,
        ),
    )(probs2d, labels2d)
    # Per-core partial losses (already scaled by 1/N) -> total loss.
    return jnp.sum(res)


def _reference_loss(output, label1, label2):
    # Pure-JAX reference mirroring torch.nn.BCELoss semantics.
    n = output.shape[0]
    p1 = output[:, 0].astype(jnp.float32)
    p2 = output[:, 1].astype(jnp.float32)
    y1 = label1.reshape(n).astype(jnp.float32)
    y2 = label2.reshape(n).astype(jnp.float32)

    def bce(p, y):
        log_p = jnp.maximum(jnp.log(p), _NEG_CLAMP)
        log_1mp = jnp.maximum(jnp.log(1.0 - p), _NEG_CLAMP)
        return jnp.mean(-(y * log_p + (1.0 - y) * log_1mp))

    return bce(p1, y1) + bce(p2, y2)


if __name__ == "__main__":
    key = jax.random.PRNGKey(0)
    k_out, k_l1, k_l2, k_out2, k_l3, k_l4 = jax.random.split(key, 6)

    # Small shape consistent with the module: batch N=8, 2 probability columns.
    N = 8
    output = jax.nn.sigmoid(jax.random.normal(k_out, (N, 2), dtype=jnp.float32))
    label1 = jax.random.bernoulli(k_l1, 0.5, (N, 1)).astype(jnp.float32)
    label2 = jax.random.bernoulli(k_l2, 0.5, (N, 1)).astype(jnp.float32)

    loss = contrastive_loss(output, label1, label2)
    jax.block_until_ready(loss)
    ref = _reference_loss(output, label1, label2)
    assert jnp.allclose(loss, ref, rtol=1e-5, atol=1e-5), (loss, ref)

    # Second check: odd N exercising the lane pad, in-kernel tail masking,
    # multi-tile accumulation and the 2-way core split (grid=(2, tiles)).
    N2 = 2500
    output2 = jax.nn.sigmoid(jax.random.normal(k_out2, (N2, 2), dtype=jnp.float32))
    label3 = jax.random.bernoulli(k_l3, 0.5, (N2, 1)).astype(jnp.float32)
    label4 = jax.random.bernoulli(k_l4, 0.5, (N2, 1)).astype(jnp.float32)
    loss2 = contrastive_loss(output2, label3, label4, block_rows=16)
    jax.block_until_ready(loss2)
    ref2 = _reference_loss(output2, label3, label4)
    assert jnp.allclose(loss2, ref2, rtol=1e-4, atol=1e-4), (loss2, ref2)

    print("KERNEL_OK")
</pallas_src>

<mosaic_0001>
module attributes {stable_mosaic.version = 11 : i64} {
  func.func @_bce_sum_kernel(%arg0: i32, %arg1: i32, %arg2: memref<16x128xf32, #tpu.memory_space<vmem>>, %arg3: memref<16x128xbf16, #tpu.memory_space<vmem>>, %arg4: memref<1x1xf32, #tpu.memory_space<vmem>>, %arg5: memref<8x128xf32, #tpu.memory_space<vmem>>) attributes {dimension_semantics = [#tpu.dimension_semantics<parallel>, #tpu.dimension_semantics<arbitrary>], iteration_bounds = array<i64: 1, 1>, scalar_prefetch = 0 : i64, scratch_operands = 1 : i64, tpu.core_type = #tpu.core_type<tc>, window_params = [{transform_indices = @transform_0, window_bounds = array<i64: 16, 128>}, {transform_indices = @transform_1, window_bounds = array<i64: 16, 128>}, {transform_indices = @transform_2, window_bounds = array<i64: 1, 1>}]} {
    %c1_i32 = arith.constant 1 : i32
    %0 = arith.muli %arg0, %c1_i32 : i32
    %1 = arith.addi %0, %arg1 : i32
    %c0_i32 = arith.constant 0 : i32
    %2 = arith.cmpi eq, %arg1, %c0_i32 : i32
    %3 = arith.extui %2 : i1 to i32
    %c0_i32_0 = arith.constant 0 : i32
    %4 = arith.cmpi ne, %3, %c0_i32_0 : i32
    scf.if %4 {
      %cst_13 = arith.constant 0.000000e+00 : f32
      %26 = vector.broadcast %cst_13 : f32 to vector<8x128xf32>
      %c0_14 = arith.constant 0 : index
      %c0_15 = arith.constant 0 : index
      %27 = vector.load %arg5[%c0_14, %c0_15] : memref<8x128xf32, #tpu.memory_space<vmem>>, vector<8x128xf32>
      tpu.vector_store %arg5[%c0_14, %c0_15], %26 {strides = array<i32>} : memref<8x128xf32, #tpu.memory_space<vmem>>, vector<8x128xf32>,
    } else {
    }
    %c0 = arith.constant 0 : index
    %c0_1 = arith.constant 0 : index
    %5 = vector.load %arg2[%c0, %c0_1] : memref<16x128xf32, #tpu.memory_space<vmem>>, vector<16x128xf32>
    %c0_2 = arith.constant 0 : index
    %c0_3 = arith.constant 0 : index
    %6 = vector.load %arg3[%c0_2, %c0_3] : memref<16x128xbf16, #tpu.memory_space<vmem>>, vector<16x128xbf16>
    %cst = arith.constant 0.000000e+00 : bf16
    %7 = vector.broadcast %cst : bf16 to vector<16x128xbf16>
    %8 = arith.cmpf one, %6, %7 : vector<16x128xbf16>
    %cst_4 = arith.constant 1.000000e+00 : f32
    %9 = vector.broadcast %cst_4 : f32 to vector<16x128xf32>
    %10 = arith.subf %9, %5 : vector<16x128xf32>
    %11 = arith.select %8, %5, %10 : vector<16x128xi1>, vector<16x128xf32>
    %12 = math.log %11 : vector<16x128xf32>
    %cst_5 = arith.constant -1.000000e+02 : f32
    %13 = vector.broadcast %cst_5 : f32 to vector<16x128xf32>
    %14 = arith.maximumf %12, %13 : vector<16x128xf32>
    %cst_6 = arith.constant 0.000000e+00 : f32
    %15 = vector.broadcast %cst_6 : f32 to vector<16x128xf32>
    %16 = arith.subf %15, %14 : vector<16x128xf32>
    %c0_i32_7 = arith.constant 0 : i32
    %17 = arith.cmpi slt, %1, %c0_i32_7 : i32
    %18 = arith.extui %17 : i1 to i32
    %c0_i32_8 = arith.constant 0 : i32
    %19 = arith.cmpi ne, %18, %c0_i32_8 : i32
    scf.if %19 {
      %c0_13 = arith.constant 0 : index
      %c0_14 = arith.constant 0 : index
      %26 = vector.load %arg5[%c0_13, %c0_14] : memref<8x128xf32, #tpu.memory_space<vmem>>, vector<8x128xf32>
      %27 = vector.shape_cast %16 : vector<16x128xf32> to vector<2x8x128xf32>
      %cst_15 = arith.constant dense<0.000000e+00> : vector<8x128xf32>
      %28 = vector.multi_reduction <add>, %27, %cst_15 [0] : vector<2x8x128xf32> to vector<8x128xf32>
      %29 = arith.addf %26, %28 : vector<8x128xf32>
      %c0_16 = arith.constant 0 : index
      %c0_17 = arith.constant 0 : index
      %30 = vector.load %arg5[%c0_16, %c0_17] : memref<8x128xf32, #tpu.memory_space<vmem>>, vector<8x128xf32>
      tpu.vector_store %arg5[%c0_16, %c0_17], %29 {strides = array<i32>} : memref<8x128xf32, #tpu.memory_space<vmem>>, vector<8x128xf32>,
    } else {
    }
    %c0_i32_9 = arith.constant 0 : i32
    %20 = arith.cmpi sge, %1, %c0_i32_9 : i32
    %21 = arith.extui %20 : i1 to i32
    %c0_i32_10 = arith.constant 0 : i32
    %22 = arith.cmpi ne, %21, %c0_i32_10 : i32
    scf.if %22 {
      %26 = tpu.iota {dimensions = array<i32: 0>} : vector<16x128xi32>
      %c16_i32 = arith.constant 16 : i32
      %27 = arith.muli %1, %c16_i32 : i32
      %28 = vector.broadcast %27 : i32 to vector<16x128xi32>
      %29 = arith.addi %28, %26 : vector<16x128xi32>
      %c1_i32_13 = arith.constant 1 : i32
      %30 = vector.broadcast %c1_i32_13 : i32 to vector<16x128xi32>
      %31 = arith.cmpi slt, %29, %30 : vector<16x128xi32>
      %cst_14 = arith.constant 0.000000e+00 : f32
      %32 = vector.broadcast %cst_14 : f32 to vector<16x128xf32>
      %33 = arith.select %31, %16, %32 : vector<16x128xi1>, vector<16x128xf32>
      %c0_15 = arith.constant 0 : index
      %c0_16 = arith.constant 0 : index
      %34 = vector.load %arg5[%c0_15, %c0_16] : memref<8x128xf32, #tpu.memory_space<vmem>>, vector<8x128xf32>
      %35 = vector.shape_cast %33 : vector<16x128xf32> to vector<2x8x128xf32>
      %cst_17 = arith.constant dense<0.000000e+00> : vector<8x128xf32>
      %36 = vector.multi_reduction <add>, %35, %cst_17 [0] : vector<2x8x128xf32> to vector<8x128xf32>
      %37 = arith.addf %34, %36 : vector<8x128xf32>
      %c0_18 = arith.constant 0 : index
      %c0_19 = arith.constant 0 : index
      %38 = vector.load %arg5[%c0_18, %c0_19] : memref<8x128xf32, #tpu.memory_space<vmem>>, vector<8x128xf32>
      tpu.vector_store %arg5[%c0_18, %c0_19], %37 {strides = array<i32>} : memref<8x128xf32, #tpu.memory_space<vmem>>, vector<8x128xf32>,
    } else {
    }
    %c0_i32_11 = arith.constant 0 : i32
    %23 = arith.cmpi eq, %arg1, %c0_i32_11 : i32
    %24 = arith.extui %23 : i1 to i32
    %c0_i32_12 = arith.constant 0 : i32
    %25 = arith.cmpi ne, %24, %c0_i32_12 : i32
    scf.if %25 {
      %c0_13 = arith.constant 0 : index
      %c0_14 = arith.constant 0 : index
      %26 = vector.load %arg5[%c0_13, %c0_14] : memref<8x128xf32, #tpu.memory_space<vmem>>, vector<8x128xf32>
      %27 = vector.shape_cast %26 : vector<8x128xf32> to vector<1x8x128xf32>
      %cst_15 = arith.constant dense<0.000000e+00> : vector<1xf32>
      %28 = vector.multi_reduction <add>, %27, %cst_15 [1, 2] : vector<1x8x128xf32> to vector<1xf32>
      %29 = vector.shape_cast %28 : vector<1xf32> to vector<1x1x1xf32>
      %30 = vector.extract %29[0, 0, 0] : f32 from vector<1x1x1xf32>
      %cst_16 = arith.constant 1.250000e-01 : f32
      %31 = arith.mulf %30, %cst_16 : f32
      %32 = vector.broadcast %31 : f32 to vector<1x1xf32>
      %c0_17 = arith.constant 0 : index
      %c0_18 = arith.constant 0 : index
      %33 = vector.load %arg4[%c0_17, %c0_18] : memref<1x1xf32, #tpu.memory_space<vmem>>, vector<1x1xf32>
      tpu.vector_store %arg4[%c0_17, %c0_18], %32 {strides = array<i32>} : memref<1x1xf32, #tpu.memory_space<vmem>>, vector<1x1xf32>,
    } else {
    }
    return
  }
  func.func @transform_0(%arg0: i32, %arg1: i32) -> (i32, i32) {
    %c1_i32 = arith.constant 1 : i32
    %0 = arith.muli %arg0, %c1_i32 : i32
    %1 = arith.addi %0, %arg1 : i32
    %c0_i32 = arith.constant 0 : i32
    %2 = arith.minsi %1, %c0_i32 : i32
    %c0_i32_0 = arith.constant 0 : i32
    %c0_i32_1 = arith.constant 0 : i32
    return %2, %c0_i32_0 : i32, i32
  }
  func.func @transform_1(%arg0: i32, %arg1: i32) -> (i32, i32) {
    %c1_i32 = arith.constant 1 : i32
    %0 = arith.muli %arg0, %c1_i32 : i32
    %1 = arith.addi %0, %arg1 : i32
    %c0_i32 = arith.constant 0 : i32
    %2 = arith.minsi %1, %c0_i32 : i32
    %c0_i32_0 = arith.constant 0 : i32
    %c0_i32_1 = arith.constant 0 : i32
    return %2, %c0_i32_0 : i32, i32
  }
  func.func @transform_2(%arg0: i32, %arg1: i32) -> (i32, i32) {
    %c0_i32 = arith.constant 0 : i32
    %c0_i32_0 = arith.constant 0 : i32
    return %arg0, %c0_i32 : i32, i32
  }
}

</mosaic_0001>

<bundles_post_ra>
// kernel: tpu_custom_call.1
= control target key start
LH: loop header
LB: loop body
LE: loop exit
PB: predicated region body
PF: predicated region fallthrough
CT: control target
= control target key end

     0   :  { %7 = vsyncpa [#allocation4], 0  ;;  %s344_s0 = inlined_call_operand.hbm [shape: f32[1,128], index: 0, kind: input, shape index: {}]   ;;  %s345_s1 = inlined_call_operand.vmem [shape: bf16[1,128], index: 1, kind: input, shape index: {}]   ;;  %s346_s2 = inlined_call_operand.hbm [shape: f32[1,1], index: 2, kind: output, shape index: {}]  }
   0x1   :  { %8 = vsyncpa [#allocation5], 0 }
   0x2   :  { %19 = vsyncadd [#allocation4], 240  ;;  %s305_s9 = smov [#allocation3]  }
   0x3   :  { %s23_s10 = sshll.u32 %s305_s9, 4  ;;  %s24_s10 = int_to_ptr.vmem [resolvable:$true] %s23_s10 }
   0x4   :  { %s269_s11 = scalar_lea.vmem %s24_s10, 16  ;;  %s273_s12 = scalar_lea.vmem %s24_s10, 256 }
   0x5   :  { %p270_p0 = scmp.ne.s32.totalorder %s24_s10, %s269_s11  ;;  %p274_p1 = scmp.lt.s32.totalorder %s24_s10, %s24_s10 }
   0x6   :  { %p275_p2 = scmp.lt.s32.totalorder %s273_s12, %s269_s11 }
   0x8   :  { %p276_p3 = por %p275_p2, %p274_p1 }
   0xa   :  { %p277_p4 = pnand %p276_p3, %p270_p0 }
   0xc   :  { %280 = shalt.err (!%p277_p4)
}
   0xd   :  { %s306_s13 = smov 16   ;;  %s307_s14 = smov 1  }
   0xe   :  { %29 = dma.hbm_to_vmem [thread:$0]  %s344_s0, 16, %s24_s10, [#allocation4], %s306_s13, %s306_s13, %s307_s14  }
   0xf   :  { %301 = dma.done.wait [#allocation4], 256  }
  0x10   :  { %302 = vsyncadd [#allocation4], 4294967040  ;;  %v146_v0 = vlaneseq  ;;  %v308_v1 = vmov 1983009808   ;;  %v91_v3 = vld [vmem:[%s345_s1] sm:$0x1] }
  0x11   :  { %v144_v2 = vunpack.c.l.s4 %v308_v1  ;;  %v92_v4 = vld [vmem:[%s345_s1 + $0x1] sm:$0x1]  ;;  %v93_v6 = vld [vmem:[%s345_s1 + $0x2] sm:$0x1]  ;;  %v94_v7 = vld [vmem:[%s345_s1 + $0x3] sm:$0x1] }
  0x12   :  { %v147_v5 = vshrl.u32 %v146_v0, 7  ;;  %vm99_vm0 = vcmp.ne.bf16.partialorder %v91_v3, 0  ;;  %vm100_vm1 = vcmp.ne.bf16.partialorder %v92_v4, 0  ;;  %vm101_vm2 = vcmp.ne.bf16.partialorder %v93_v6, 0  ;;  %v89_v23 = vld [vmem:[#allocation3] sm:$0xff]  ;;  %s310_s1 = smov [#allocation6]  }
  0x13   :  { %v145_v8 = vunpack.c.0.s8 %v144_v2  ;;  %vm102_vm3 = vcmp.ne.bf16.partialorder %v94_v7, 0  ;;  %v309_v9 = vmov 0   ;;  %v107_v28 = vsub.f32 1.0, %v89_v23  ;;  %s237_s24 = sshll.u32 %s310_s1, 4  ;;  %s238_s24 = int_to_ptr.vmem [resolvable:$true] %s237_s24 }
  0x14   :  { %v109_v10 = vsel %vm99_vm0, 65537, %v309_v9  ;;  %v110_v11 = vsel %vm100_vm1, 65537, %v309_v9  ;;  %v111_v12 = vsel %vm101_vm2, 65537, %v309_v9  ;;  %v112_v13 = vsel %vm102_vm3, 65537, %v309_v9  ;;  %s281_s27 = scalar_lea.vmem %s238_s24, 16  ;;  %s285_s28 = scalar_lea.vmem %s238_s24, 32 }
  0x15   :  { %v117_v14 = vunpack.c.l.b16 %v109_v10  ;;  %v118_v15 = vunpack.c.l.b16 %v110_v11  ;;  %v119_v16 = vunpack.c.l.b16 %v111_v12  ;;  %v120_v17 = vunpack.c.l.b16 %v112_v13  ;;  %p282_p5 = scmp.ne.s32.totalorder %s238_s24, %s281_s27  ;;  %p286_p6 = scmp.lt.s32.totalorder %s238_s24, %s238_s24 }
  0x16   :  { %v148_v18 = vsub.s32 %v145_v8, %v147_v5  ;;  %vm206_vm9 = vcmp.lt.s32.totalorder %v147_v5, 1  ;;  %vm229_vm10 = vcmask 0   ;;  %p287_p7 = scmp.lt.s32.totalorder %s285_s28, %s281_s27 }
  0x17   :  { %vm125_vm4 = vcmp.ne.s32.totalorder %v117_v14, 0  ;;  %vm126_vm5 = vcmp.ne.s32.totalorder %v118_v15, 0  ;;  %vm127_vm6 = vcmp.ne.s32.totalorder %v119_v16, 0  ;;  %vm128_vm7 = vcmp.ne.s32.totalorder %v120_v17, 0 }
  0x18   :  { %v133_v19 = vsel %vm125_vm4, 1, %v309_v9  ;;  %v134_v20 = vsel %vm126_vm5, 1, %v309_v9  ;;  %v135_v21 = vsel %vm127_vm6, 1, %v309_v9  ;;  %v136_v22 = vsel %vm128_vm7, 1, %v309_v9  ;;  %p288_p8 = por %p287_p7, %p286_p6 }
  0x19   :  { %v141_v24 = vcombine.low %v133_v19, %v134_v20  ;;  %v142_v25 = vcombine.low %v135_v21, %v136_v22 }
  0x1a   :  { %p289_p9 = pnand %p288_p8, %p282_p5 }
  0x1b   :  { %v149_v26 = vrot.slane %v141_v24, %v148_v18  ;;  %v156_v27 = vrot.slane %v142_v25, %v148_v18 }
  0x1d   :  { %v157_v29 = vcombine.low %v149_v26, %v156_v27 }
  0x1f   :  { %vm175_vm8 = vcmp.ne.s32.totalorder %v157_v29, 0 }
  0x20   :  { %v177_v30 = vsel %vm175_vm8, %v89_v23, %v107_v28 }
  0x21   :  { %259 = vlog2.f32 %v177_v30 }
  0x2e   :  { %v260_v31 = vpop.eup %259 }
  0x2f   :  { %v180_v32 = vmul.f32 0.6931472, %v260_v31 }
  0x31   :  { %v183_v33 = vmax.f32 %v180_v32, -100.0 }
  0x33   :  { %v185_v34 = vsub.f32 0.0, %v183_v33 }
  0x35   :  { %v208_v35 = vsel %vm206_vm9, %v185_v34, 0.0 }
  0x36   :  { %218 = vadd.xlane.f32.xlu0 %v208_v35 }
  0xbf   :  { %v219_v36 = vpop.xlane.xlu0 %218 }
  0xc0   :  { %v220_v37 = vrot.slane %v219_v36, 4 }
  0xc2   :  { %v221_v38 = vadd.f32 %v220_v37, %v219_v36 }
  0xc4   :  { %v222_v39 = vrot.slane %v221_v38, 2 }
  0xc6   :  { %v223_v40 = vadd.f32 %v222_v39, %v221_v38 }
  0xc8   :  { %v224_v41 = vrot.slane %v223_v40, 1 }
  0xca   :  { %v225_v42 = vadd.f32 %v224_v41, %v223_v40 }
  0xcc   :  { %251 = vpush %v225_v42 }
  0xfd   :  { %s252_s25 = spop %251 }
  0xfe   :  { %s227_s26 = smul.f32 0.125, %s252_s25 }
 0x100   :  { %v228_v43 = vstv %s227_s26 }
 0x101   :  { %230 = vst.msk [vmem:[#allocation6] sm:$0x1] %vm229_vm10, %v228_v43 }
 0x102   :  { %292 = shalt.err (!%p289_p9)
}
 0x103   :  { %240 = dma.vmem_to_hbm [thread:$0]  %s238_s24, 16, %s346_s2, [#allocation5]  }
 0x104   :  { %303 = dma.done.wait [#allocation5], 16  }
 0x105   :  { %304 = vsyncadd [#allocation5], 4294967280 }
 0x106   :  { %244 = vsyncpa [#allocation4], 1 }
 0x107   :  { %245 = vsyncpa [#allocation5], 1 }

</bundles_post_ra>
